<compile_context>
chip_gen: v7x
topology: tpu7x:2x2x1
jax: 0.10.0
libtpu: 0.0.40
codegen_flags: <defaults>
</compile_context>

<pallas_src>
import jax
import jax.numpy as jnp
from jax.experimental import pallas as pl
from jax.experimental.pallas import tpu as pltpu

EPS_BN = 1e-5  # BatchNorm eps


def _se_res2net_kernel(valid_ref,                    # scalar prefetch: [N] int32
                       x_ref,                        # [1, C, L] f32
                       w1_ref, b1_ref, sc1_ref, sh1_ref,
                       wr_ref, br_ref, scr_ref, shr_ref,
                       w2_ref, b2_ref, sc2_ref, sh2_ref,
                       wse1_ref, bse1_ref, wse2_ref, bse2_ref,
                       out_ref):                     # [1, C, L] f32
    b = pl.program_id(0)
    x = x_ref[0]                                     # [C, L] f32 (residual kept f32)
    C, L = x.shape
    S = wr_ref.shape[0] + 1                          # res2net scale
    Cc = C // S

    def conv_relu_bn(w_bf16, h_f32, bias, scale, shift):
        # 1x1 conv == channel matmul; bf16 operands, f32 accumulation (MXU).
        z = jnp.dot(w_bf16, h_f32.astype(jnp.bfloat16),
                    preferred_element_type=jnp.float32)
        z = jnp.maximum(z + bias, 0.0)               # ReLU
        return z * scale + shift                     # folded eval-mode BatchNorm

    # ---- tdnn1 (1x1 conv -> ReLU -> BN) -------------------------------------
    h = conv_relu_bn(w1_ref[...], x, b1_ref[...], sc1_ref[...], sh1_ref[...])

    # ---- Res2Net block (kernel_size=1 path, sequential chunk chain) ---------
    ys = [h[0:Cc, :]]
    y_prev = None
    for i in range(1, S):
        xi = h[i * Cc:(i + 1) * Cc, :]
        inp = xi if i == 1 else xi + y_prev
        j = i - 1
        y_prev = conv_relu_bn(wr_ref[j], inp, br_ref[j], scr_ref[j], shr_ref[j])
        ys.append(y_prev)
    y = jnp.concatenate(ys, axis=0)                  # [C, L]

    # ---- tdnn2 ---------------------------------------------------------------
    h2 = conv_relu_bn(w2_ref[...], y, b2_ref[...], sc2_ref[...], sh2_ref[...])

    # ---- SE block (length-masked time mean built in-kernel) ------------------
    vl = valid_ref[b]                                         # int32 valid frames
    t_idx = jax.lax.broadcasted_iota(jnp.int32, (1, L), 1)    # [1, L]
    mask = (t_idx < vl).astype(jnp.float32)                   # [1, L]
    inv_total = 1.0 / vl.astype(jnp.float32)
    s = jnp.sum(h2 * mask, axis=1, keepdims=True) * inv_total  # [C, 1]

    se = jnp.dot(wse1_ref[...], s.astype(jnp.bfloat16),
                 preferred_element_type=jnp.float32) + bse1_ref[...]
    se = jnp.maximum(se, 0.0)                                  # [SE, 1]
    g = jnp.dot(wse2_ref[...], se.astype(jnp.bfloat16),
                preferred_element_type=jnp.float32) + bse2_ref[...]
    g = jax.nn.sigmoid(g)                                      # [C, 1]

    # ---- gate + residual -----------------------------------------------------
    out_ref[0] = h2 * g + x


def se_res2net_block(x, params, lengths=None):
    """x: [N, C, L] f32 -> [N, C, L] f32 (in_channels == out_channels)."""
    N, C, L = x.shape
    Sm1, Cc, _ = params["wr"].shape

    if lengths is None:
        valid = jnp.full((N,), L, dtype=jnp.int32)
    else:
        # mask[t] = t < lengths*L  <=>  t < ceil(lengths*L)
        valid = jnp.ceil(lengths.astype(jnp.float32) * L).astype(jnp.int32)

    def fold_bn(gamma, beta, mean, var):
        sc = gamma / jnp.sqrt(var + EPS_BN)
        return sc, beta - mean * sc

    sc1, sh1 = fold_bn(params["bn1_gamma"], params["bn1_beta"],
                       params["bn1_mean"], params["bn1_var"])
    scr, shr = fold_bn(params["bnr_gamma"], params["bnr_beta"],
                       params["bnr_mean"], params["bnr_var"])   # [S-1, Cc]
    sc2, sh2 = fold_bn(params["bn2_gamma"], params["bn2_beta"],
                       params["bn2_mean"], params["bn2_var"])

    col = lambda v: v.astype(jnp.float32)[..., None]   # trailing broadcast dim

    tensor_args = (
        x.astype(jnp.float32),
        params["w1"].astype(jnp.bfloat16), col(params["b1"]), col(sc1), col(sh1),
        params["wr"].astype(jnp.bfloat16), col(params["br"]), col(scr), col(shr),
        params["w2"].astype(jnp.bfloat16), col(params["b2"]), col(sc2), col(sh2),
        params["w_se1"].astype(jnp.bfloat16), col(params["b_se1"]),
        params["w_se2"].astype(jnp.bfloat16), col(params["b_se2"]),
    )

    def full_spec(arr):
        nd = arr.ndim
        return pl.BlockSpec(arr.shape, lambda n, vl, _nd=nd: (0,) * _nd)

    in_specs = [pl.BlockSpec((1, C, L), lambda n, vl: (n, 0, 0))]
    in_specs += [full_spec(a) for a in tensor_args[1:]]

    # NOTE: at real ECAPA sizes (C~1024-1536, long L) set
    # pltpu.CompilerParams(vmem_limit_bytes=...) and tile L; at these demo
    # shapes the resident set is a few KiB so the defaults are fine.
    out = pl.pallas_call(
        _se_res2net_kernel,
        out_shape=jax.ShapeDtypeStruct((N, C, L), jnp.float32),
        grid_spec=pltpu.PrefetchScalarGridSpec(
            num_scalar_prefetch=1,
            grid=(N,),
            in_specs=in_specs,
            out_specs=pl.BlockSpec((1, C, L), lambda n, vl: (n, 0, 0)),
        ),
        compiler_params=pltpu.CompilerParams(
            dimension_semantics=("parallel",)),
    )(valid, *tensor_args)
    return out


def _reference(x, params, lengths=None):
    """Pure-JAX f32 reference mirroring the PyTorch forward (eval-mode BN, k=1)."""
    def bn(h, gamma, beta, mean, var):
        return ((h - mean[None, :, None]) / jnp.sqrt(var[None, :, None] + EPS_BN)
                * gamma[None, :, None] + beta[None, :, None])

    def tdnn(h, w, b, g, bt, m, v):
        y = jnp.einsum("oc,ncl->nol", w, h) + b[None, :, None]
        return bn(jnp.maximum(y, 0.0), g, bt, m, v)

    N, C, L = x.shape
    S = params["wr"].shape[0] + 1
    residual = x

    h = tdnn(x, params["w1"], params["b1"], params["bn1_gamma"],
             params["bn1_beta"], params["bn1_mean"], params["bn1_var"])

    chunks = jnp.split(h, S, axis=1)
    ys = [chunks[0]]
    y_prev = None
    for i in range(1, S):
        xi = chunks[i]
        inp = xi if i == 1 else xi + y_prev
        j = i - 1
        y_prev = tdnn(inp, params["wr"][j], params["br"][j],
                      params["bnr_gamma"][j], params["bnr_beta"][j],
                      params["bnr_mean"][j], params["bnr_var"][j])
        ys.append(y_prev)
    y = jnp.concatenate(ys, axis=1)

    h2 = tdnn(y, params["w2"], params["b2"], params["bn2_gamma"],
              params["bn2_beta"], params["bn2_mean"], params["bn2_var"])

    if lengths is None:
        s = h2.mean(axis=2, keepdims=True)
    else:
        mask = (jnp.arange(L)[None, :]
                < (lengths * L)[:, None]).astype(jnp.float32)[:, None, :]
        total = mask.sum(axis=2, keepdims=True)
        s = (h2 * mask).sum(axis=2, keepdims=True) / total

    se = jnp.maximum(jnp.einsum("sc,ncl->nsl", params["w_se1"], s)
                     + params["b_se1"][None, :, None], 0.0)
    g = jax.nn.sigmoid(jnp.einsum("cs,nsl->ncl", params["w_se2"], se)
                       + params["b_se2"][None, :, None])
    return h2 * g + residual


if __name__ == "__main__":
    N, C, L = 2, 16, 32        # batch, channels (in == out), time
    S, SE = 4, 8               # res2net_scale, se_channels
    Cc = C // S

    key = jax.random.PRNGKey(0)
    ks = jax.random.split(key, 24)

    def nrm(k, shape, scale=1.0):
        return scale * jax.random.normal(k, shape, jnp.float32)

    x = nrm(ks[0], (N, C, L))

    params = {
        # tdnn1: Conv1d(C->C, k=1) + BN
        "w1": nrm(ks[1], (C, C), 0.1), "b1": nrm(ks[2], (C,), 0.1),
        "bn1_gamma": 1.0 + nrm(ks[3], (C,), 0.1),
        "bn1_beta": nrm(ks[4], (C,), 0.1),
        "bn1_mean": nrm(ks[5], (C,), 0.1),
        "bn1_var": 0.9 + 0.2 * jax.random.uniform(ks[6], (C,), jnp.float32),
        # res2net: (scale-1) TDNNBlocks on channel chunks
        "wr": nrm(ks[7], (S - 1, Cc, Cc), 0.1), "br": nrm(ks[8], (S - 1, Cc), 0.1),
        "bnr_gamma": 1.0 + nrm(ks[9], (S - 1, Cc), 0.1),
        "bnr_beta": nrm(ks[10], (S - 1, Cc), 0.1),
        "bnr_mean": nrm(ks[11], (S - 1, Cc), 0.1),
        "bnr_var": 0.9 + 0.2 * jax.random.uniform(ks[12], (S - 1, Cc), jnp.float32),
        # tdnn2: Conv1d(C->C, k=1) + BN
        "w2": nrm(ks[13], (C, C), 0.1), "b2": nrm(ks[14], (C,), 0.1),
        "bn2_gamma": 1.0 + nrm(ks[15], (C,), 0.1),
        "bn2_beta": nrm(ks[16], (C,), 0.1),
        "bn2_mean": nrm(ks[17], (C,), 0.1),
        "bn2_var": 0.9 + 0.2 * jax.random.uniform(ks[18], (C,), jnp.float32),
        # SE block: Conv1d(C->SE, k=1), Conv1d(SE->C, k=1)
        "w_se1": nrm(ks[19], (SE, C), 0.1), "b_se1": nrm(ks[20], (SE,), 0.1),
        "w_se2": nrm(ks[21], (C, SE), 0.1), "b_se2": nrm(ks[22], (C,), 0.1),
    }

    out = se_res2net_block(x, params)          # lengths=None (docstring default)
    out = jax.block_until_ready(out)

    ref = _reference(x, params)
    assert out.shape == (N, C, L)
    # bf16 MXU matmuls with f32 accumulation -> small relative error vs f32 ref
    assert jnp.allclose(out, ref, atol=2e-2, rtol=2e-2)

    print("KERNEL_OK")
</pallas_src>

<mosaic_0001>
module attributes {stable_mosaic.version = 11 : i64} {
  func.func @_se_res2net_kernel(%arg0: i32, %arg1: memref<2xi32, #tpu.memory_space<smem>>, %arg2: memref<1x16x32xf32, #tpu.memory_space<vmem>>, %arg3: memref<16x16xbf16, #tpu.memory_space<vmem>>, %arg4: memref<16x1xf32, #tpu.memory_space<vmem>>, %arg5: memref<16x1xf32, #tpu.memory_space<vmem>>, %arg6: memref<16x1xf32, #tpu.memory_space<vmem>>, %arg7: memref<3x4x4xbf16, #tpu.memory_space<vmem>>, %arg8: memref<3x4x1xf32, #tpu.memory_space<vmem>>, %arg9: memref<3x4x1xf32, #tpu.memory_space<vmem>>, %arg10: memref<3x4x1xf32, #tpu.memory_space<vmem>>, %arg11: memref<16x16xbf16, #tpu.memory_space<vmem>>, %arg12: memref<16x1xf32, #tpu.memory_space<vmem>>, %arg13: memref<16x1xf32, #tpu.memory_space<vmem>>, %arg14: memref<16x1xf32, #tpu.memory_space<vmem>>, %arg15: memref<8x16xbf16, #tpu.memory_space<vmem>>, %arg16: memref<8x1xf32, #tpu.memory_space<vmem>>, %arg17: memref<16x8xbf16, #tpu.memory_space<vmem>>, %arg18: memref<16x1xf32, #tpu.memory_space<vmem>>, %arg19: memref<1x16x32xf32, #tpu.memory_space<vmem>>) attributes {dimension_semantics = [#tpu.dimension_semantics<parallel>], iteration_bounds = array<i64: 2>, scalar_prefetch = 1 : i64, scratch_operands = 0 : i64, tpu.core_type = #tpu.core_type<tc>, window_params = [{transform_indices = @transform_0, window_bounds = array<i64: 1, 16, 32>}, {pipeline_mode = #tpu.pipeline_mode<synchronous>, transform_indices = @transform_1, window_bounds = array<i64: 16, 16>}, {pipeline_mode = #tpu.pipeline_mode<synchronous>, transform_indices = @transform_2, window_bounds = array<i64: 16, 1>}, {pipeline_mode = #tpu.pipeline_mode<synchronous>, transform_indices = @transform_3, window_bounds = array<i64: 16, 1>}, {pipeline_mode = #tpu.pipeline_mode<synchronous>, transform_indices = @transform_4, window_bounds = array<i64: 16, 1>}, {pipeline_mode = #tpu.pipeline_mode<synchronous>, transform_indices = @transform_5, window_bounds = array<i64: 3, 4, 4>}, {pipeline_mode = #tpu.pipeline_mode<synchronous>, transform_indices = @transform_6, window_bounds = array<i64: 3, 4, 1>}, {pipeline_mode = #tpu.pipeline_mode<synchronous>, transform_indices = @transform_7, window_bounds = array<i64: 3, 4, 1>}, {pipeline_mode = #tpu.pipeline_mode<synchronous>, transform_indices = @transform_8, window_bounds = array<i64: 3, 4, 1>}, {pipeline_mode = #tpu.pipeline_mode<synchronous>, transform_indices = @transform_9, window_bounds = array<i64: 16, 16>}, {pipeline_mode = #tpu.pipeline_mode<synchronous>, transform_indices = @transform_10, window_bounds = array<i64: 16, 1>}, {pipeline_mode = #tpu.pipeline_mode<synchronous>, transform_indices = @transform_11, window_bounds = array<i64: 16, 1>}, {pipeline_mode = #tpu.pipeline_mode<synchronous>, transform_indices = @transform_12, window_bounds = array<i64: 16, 1>}, {pipeline_mode = #tpu.pipeline_mode<synchronous>, transform_indices = @transform_13, window_bounds = array<i64: 8, 16>}, {pipeline_mode = #tpu.pipeline_mode<synchronous>, transform_indices = @transform_14, window_bounds = array<i64: 8, 1>}, {pipeline_mode = #tpu.pipeline_mode<synchronous>, transform_indices = @transform_15, window_bounds = array<i64: 16, 8>}, {pipeline_mode = #tpu.pipeline_mode<synchronous>, transform_indices = @transform_16, window_bounds = array<i64: 16, 1>}, {transform_indices = @transform_17, window_bounds = array<i64: 1, 16, 32>}]} {
    %c0 = arith.constant 0 : index
    %c0_0 = arith.constant 0 : index
    %c0_1 = arith.constant 0 : index
    %0 = vector.load %arg2[%c0, %c0_0, %c0_1] : memref<1x16x32xf32, #tpu.memory_space<vmem>>, vector<1x16x32xf32>
    %1 = vector.shape_cast %0 : vector<1x16x32xf32> to vector<16x32xf32>
    %c0_2 = arith.constant 0 : index
    %c0_3 = arith.constant 0 : index
    %2 = vector.load %arg3[%c0_2, %c0_3] : memref<16x16xbf16, #tpu.memory_space<vmem>>, vector<16x16xbf16>
    %c0_4 = arith.constant 0 : index
    %c0_5 = arith.constant 0 : index
    %3 = vector.load %arg4[%c0_4, %c0_5] : memref<16x1xf32, #tpu.memory_space<vmem>>, vector<16x1xf32>
    %c0_6 = arith.constant 0 : index
    %c0_7 = arith.constant 0 : index
    %4 = vector.load %arg5[%c0_6, %c0_7] : memref<16x1xf32, #tpu.memory_space<vmem>>, vector<16x1xf32>
    %c0_8 = arith.constant 0 : index
    %c0_9 = arith.constant 0 : index
    %5 = vector.load %arg6[%c0_8, %c0_9] : memref<16x1xf32, #tpu.memory_space<vmem>>, vector<16x1xf32>
    %6 = arith.truncf %1 : vector<16x32xf32> to vector<16x32xbf16>
    %cst = arith.constant dense<0.000000e+00> : vector<16x32xf32>
    %7 = tpu.matmul %2, %6, %cst {dimension_numbers = #tpu.dot_dimension_numbers<[1], [0], [0], [1], [0, 0, 1, 1], [], []>} : vector<16x16xbf16>, vector<16x32xbf16>, vector<16x32xf32> -> vector<16x32xf32>
    %8 = vector.broadcast %3 : vector<16x1xf32> to vector<16x32xf32>
    %9 = arith.addf %7, %8 : vector<16x32xf32>
    %cst_10 = arith.constant 0.000000e+00 : f32
    %10 = vector.broadcast %cst_10 : f32 to vector<16x32xf32>
    %11 = arith.maximumf %9, %10 : vector<16x32xf32>
    %12 = vector.broadcast %4 : vector<16x1xf32> to vector<16x32xf32>
    %13 = arith.mulf %11, %12 : vector<16x32xf32>
    %14 = vector.broadcast %5 : vector<16x1xf32> to vector<16x32xf32>
    %15 = arith.addf %13, %14 : vector<16x32xf32>
    %16 = vector.extract_strided_slice %15 {offsets = [0, 0], sizes = [4, 32], strides = [1, 1]} : vector<16x32xf32> to vector<4x32xf32>
    %17 = vector.extract_strided_slice %15 {offsets = [4, 0], sizes = [4, 32], strides = [1, 1]} : vector<16x32xf32> to vector<4x32xf32>
    %c0_11 = arith.constant 0 : index
    %c0_12 = arith.constant 0 : index
    %c0_13 = arith.constant 0 : index
    %18 = vector.load %arg7[%c0_11, %c0_12, %c0_13] : memref<3x4x4xbf16, #tpu.memory_space<vmem>>, vector<1x4x4xbf16>
    %19 = vector.shape_cast %18 : vector<1x4x4xbf16> to vector<4x4xbf16>
    %c0_14 = arith.constant 0 : index
    %c0_15 = arith.constant 0 : index
    %c0_16 = arith.constant 0 : index
    %20 = vector.load %arg8[%c0_14, %c0_15, %c0_16] : memref<3x4x1xf32, #tpu.memory_space<vmem>>, vector<1x4x1xf32>
    %21 = vector.shape_cast %20 : vector<1x4x1xf32> to vector<4x1xf32>
    %c0_17 = arith.constant 0 : index
    %c0_18 = arith.constant 0 : index
    %c0_19 = arith.constant 0 : index
    %22 = vector.load %arg9[%c0_17, %c0_18, %c0_19] : memref<3x4x1xf32, #tpu.memory_space<vmem>>, vector<1x4x1xf32>
    %23 = vector.shape_cast %22 : vector<1x4x1xf32> to vector<4x1xf32>
    %c0_20 = arith.constant 0 : index
    %c0_21 = arith.constant 0 : index
    %c0_22 = arith.constant 0 : index
    %24 = vector.load %arg10[%c0_20, %c0_21, %c0_22] : memref<3x4x1xf32, #tpu.memory_space<vmem>>, vector<1x4x1xf32>
    %25 = vector.shape_cast %24 : vector<1x4x1xf32> to vector<4x1xf32>
    %26 = arith.truncf %17 : vector<4x32xf32> to vector<4x32xbf16>
    %cst_23 = arith.constant dense<0.000000e+00> : vector<4x32xf32>
    %27 = tpu.matmul %19, %26, %cst_23 {dimension_numbers = #tpu.dot_dimension_numbers<[1], [0], [0], [1], [0, 0, 1, 1], [], []>} : vector<4x4xbf16>, vector<4x32xbf16>, vector<4x32xf32> -> vector<4x32xf32>
    %28 = vector.broadcast %21 : vector<4x1xf32> to vector<4x32xf32>
    %29 = arith.addf %27, %28 : vector<4x32xf32>
    %cst_24 = arith.constant 0.000000e+00 : f32
    %30 = vector.broadcast %cst_24 : f32 to vector<4x32xf32>
    %31 = arith.maximumf %29, %30 : vector<4x32xf32>
    %32 = vector.broadcast %23 : vector<4x1xf32> to vector<4x32xf32>
    %33 = arith.mulf %31, %32 : vector<4x32xf32>
    %34 = vector.broadcast %25 : vector<4x1xf32> to vector<4x32xf32>
    %35 = arith.addf %33, %34 : vector<4x32xf32>
    %36 = vector.extract_strided_slice %15 {offsets = [8, 0], sizes = [4, 32], strides = [1, 1]} : vector<16x32xf32> to vector<4x32xf32>
    %37 = arith.addf %36, %35 : vector<4x32xf32>
    %c1 = arith.constant 1 : index
    %c0_25 = arith.constant 0 : index
    %c0_26 = arith.constant 0 : index
    %38 = vector.load %arg7[%c1, %c0_25, %c0_26] : memref<3x4x4xbf16, #tpu.memory_space<vmem>>, vector<1x4x4xbf16>
    %39 = vector.shape_cast %38 : vector<1x4x4xbf16> to vector<4x4xbf16>
    %c1_27 = arith.constant 1 : index
    %c0_28 = arith.constant 0 : index
    %c0_29 = arith.constant 0 : index
    %40 = vector.load %arg8[%c1_27, %c0_28, %c0_29] : memref<3x4x1xf32, #tpu.memory_space<vmem>>, vector<1x4x1xf32>
    %41 = vector.shape_cast %40 : vector<1x4x1xf32> to vector<4x1xf32>
    %c1_30 = arith.constant 1 : index
    %c0_31 = arith.constant 0 : index
    %c0_32 = arith.constant 0 : index
    %42 = vector.load %arg9[%c1_30, %c0_31, %c0_32] : memref<3x4x1xf32, #tpu.memory_space<vmem>>, vector<1x4x1xf32>
    %43 = vector.shape_cast %42 : vector<1x4x1xf32> to vector<4x1xf32>
    %c1_33 = arith.constant 1 : index
    %c0_34 = arith.constant 0 : index
    %c0_35 = arith.constant 0 : index
    %44 = vector.load %arg10[%c1_33, %c0_34, %c0_35] : memref<3x4x1xf32, #tpu.memory_space<vmem>>, vector<1x4x1xf32>
    %45 = vector.shape_cast %44 : vector<1x4x1xf32> to vector<4x1xf32>
    %46 = arith.truncf %37 : vector<4x32xf32> to vector<4x32xbf16>
    %cst_36 = arith.constant dense<0.000000e+00> : vector<4x32xf32>
    %47 = tpu.matmul %39, %46, %cst_36 {dimension_numbers = #tpu.dot_dimension_numbers<[1], [0], [0], [1], [0, 0, 1, 1], [], []>} : vector<4x4xbf16>, vector<4x32xbf16>, vector<4x32xf32> -> vector<4x32xf32>
    %48 = vector.broadcast %41 : vector<4x1xf32> to vector<4x32xf32>
    %49 = arith.addf %47, %48 : vector<4x32xf32>
    %cst_37 = arith.constant 0.000000e+00 : f32
    %50 = vector.broadcast %cst_37 : f32 to vector<4x32xf32>
    %51 = arith.maximumf %49, %50 : vector<4x32xf32>
    %52 = vector.broadcast %43 : vector<4x1xf32> to vector<4x32xf32>
    %53 = arith.mulf %51, %52 : vector<4x32xf32>
    %54 = vector.broadcast %45 : vector<4x1xf32> to vector<4x32xf32>
    %55 = arith.addf %53, %54 : vector<4x32xf32>
    %56 = vector.extract_strided_slice %15 {offsets = [12, 0], sizes = [4, 32], strides = [1, 1]} : vector<16x32xf32> to vector<4x32xf32>
    %57 = arith.addf %56, %55 : vector<4x32xf32>
    %c2 = arith.constant 2 : index
    %c0_38 = arith.constant 0 : index
    %c0_39 = arith.constant 0 : index
    %58 = vector.load %arg7[%c2, %c0_38, %c0_39] : memref<3x4x4xbf16, #tpu.memory_space<vmem>>, vector<1x4x4xbf16>
    %59 = vector.shape_cast %58 : vector<1x4x4xbf16> to vector<4x4xbf16>
    %c2_40 = arith.constant 2 : index
    %c0_41 = arith.constant 0 : index
    %c0_42 = arith.constant 0 : index
    %60 = vector.load %arg8[%c2_40, %c0_41, %c0_42] : memref<3x4x1xf32, #tpu.memory_space<vmem>>, vector<1x4x1xf32>
    %61 = vector.shape_cast %60 : vector<1x4x1xf32> to vector<4x1xf32>
    %c2_43 = arith.constant 2 : index
    %c0_44 = arith.constant 0 : index
    %c0_45 = arith.constant 0 : index
    %62 = vector.load %arg9[%c2_43, %c0_44, %c0_45] : memref<3x4x1xf32, #tpu.memory_space<vmem>>, vector<1x4x1xf32>
    %63 = vector.shape_cast %62 : vector<1x4x1xf32> to vector<4x1xf32>
    %c2_46 = arith.constant 2 : index
    %c0_47 = arith.constant 0 : index
    %c0_48 = arith.constant 0 : index
    %64 = vector.load %arg10[%c2_46, %c0_47, %c0_48] : memref<3x4x1xf32, #tpu.memory_space<vmem>>, vector<1x4x1xf32>
    %65 = vector.shape_cast %64 : vector<1x4x1xf32> to vector<4x1xf32>
    %66 = arith.truncf %57 : vector<4x32xf32> to vector<4x32xbf16>
    %cst_49 = arith.constant dense<0.000000e+00> : vector<4x32xf32>
    %67 = tpu.matmul %59, %66, %cst_49 {dimension_numbers = #tpu.dot_dimension_numbers<[1], [0], [0], [1], [0, 0, 1, 1], [], []>} : vector<4x4xbf16>, vector<4x32xbf16>, vector<4x32xf32> -> vector<4x32xf32>
    %68 = vector.broadcast %61 : vector<4x1xf32> to vector<4x32xf32>
    %69 = arith.addf %67, %68 : vector<4x32xf32>
    %cst_50 = arith.constant 0.000000e+00 : f32
    %70 = vector.broadcast %cst_50 : f32 to vector<4x32xf32>
    %71 = arith.maximumf %69, %70 : vector<4x32xf32>
    %72 = vector.broadcast %63 : vector<4x1xf32> to vector<4x32xf32>
    %73 = arith.mulf %71, %72 : vector<4x32xf32>
    %74 = vector.broadcast %65 : vector<4x1xf32> to vector<4x32xf32>
    %75 = arith.addf %73, %74 : vector<4x32xf32>
    %76 = tpu.concatenate %16, %35, %55, %75 in 0 : vector<4x32xf32>, vector<4x32xf32>, vector<4x32xf32>, vector<4x32xf32> -> vector<16x32xf32>
    %c0_51 = arith.constant 0 : index
    %c0_52 = arith.constant 0 : index
    %77 = vector.load %arg11[%c0_51, %c0_52] : memref<16x16xbf16, #tpu.memory_space<vmem>>, vector<16x16xbf16>
    %c0_53 = arith.constant 0 : index
    %c0_54 = arith.constant 0 : index
    %78 = vector.load %arg12[%c0_53, %c0_54] : memref<16x1xf32, #tpu.memory_space<vmem>>, vector<16x1xf32>
    %c0_55 = arith.constant 0 : index
    %c0_56 = arith.constant 0 : index
    %79 = vector.load %arg13[%c0_55, %c0_56] : memref<16x1xf32, #tpu.memory_space<vmem>>, vector<16x1xf32>
    %c0_57 = arith.constant 0 : index
    %c0_58 = arith.constant 0 : index
    %80 = vector.load %arg14[%c0_57, %c0_58] : memref<16x1xf32, #tpu.memory_space<vmem>>, vector<16x1xf32>
    %81 = arith.truncf %76 : vector<16x32xf32> to vector<16x32xbf16>
    %cst_59 = arith.constant dense<0.000000e+00> : vector<16x32xf32>
    %82 = tpu.matmul %77, %81, %cst_59 {dimension_numbers = #tpu.dot_dimension_numbers<[1], [0], [0], [1], [0, 0, 1, 1], [], []>} : vector<16x16xbf16>, vector<16x32xbf16>, vector<16x32xf32> -> vector<16x32xf32>
    %83 = vector.broadcast %78 : vector<16x1xf32> to vector<16x32xf32>
    %84 = arith.addf %82, %83 : vector<16x32xf32>
    %cst_60 = arith.constant 0.000000e+00 : f32
    %85 = vector.broadcast %cst_60 : f32 to vector<16x32xf32>
    %86 = arith.maximumf %84, %85 : vector<16x32xf32>
    %87 = vector.broadcast %79 : vector<16x1xf32> to vector<16x32xf32>
    %88 = arith.mulf %86, %87 : vector<16x32xf32>
    %89 = vector.broadcast %80 : vector<16x1xf32> to vector<16x32xf32>
    %90 = arith.addf %88, %89 : vector<16x32xf32>
    %91 = arith.index_cast %arg0 : i32 to index
    %92 = memref.load %arg1[%91] : memref<2xi32, #tpu.memory_space<smem>>
    %93 = tpu.iota {dimensions = array<i32: 1>} : vector<1x32xi32>
    %94 = vector.broadcast %92 : i32 to vector<1x32xi32>
    %95 = arith.cmpi slt, %93, %94 : vector<1x32xi32>
    %96 = arith.extui %95 : vector<1x32xi1> to vector<1x32xi32>
    %97 = arith.sitofp %96 : vector<1x32xi32> to vector<1x32xf32>
    %98 = arith.sitofp %92 : i32 to f32
    %cst_61 = arith.constant 1.000000e+00 : f32
    %99 = arith.divf %cst_61, %98 : f32
    %100 = vector.broadcast %97 : vector<1x32xf32> to vector<16x32xf32>
    %101 = arith.mulf %90, %100 : vector<16x32xf32>
    %cst_62 = arith.constant dense<0.000000e+00> : vector<16xf32>
    %102 = vector.multi_reduction <add>, %101, %cst_62 [1] : vector<16x32xf32> to vector<16xf32>
    %103 = vector.shape_cast %102 : vector<16xf32> to vector<16x1xf32>
    %104 = vector.broadcast %99 : f32 to vector<16x1xf32>
    %105 = arith.mulf %103, %104 : vector<16x1xf32>
    %c0_63 = arith.constant 0 : index
    %c0_64 = arith.constant 0 : index
    %106 = vector.load %arg15[%c0_63, %c0_64] : memref<8x16xbf16, #tpu.memory_space<vmem>>, vector<8x16xbf16>
    %107 = arith.truncf %105 : vector<16x1xf32> to vector<16x1xbf16>
    %cst_65 = arith.constant dense<0.000000e+00> : vector<8x1xf32>
    %108 = tpu.matmul %106, %107, %cst_65 {dimension_numbers = #tpu.dot_dimension_numbers<[1], [0], [0], [1], [0, 0, 1, 1], [], []>} : vector<8x16xbf16>, vector<16x1xbf16>, vector<8x1xf32> -> vector<8x1xf32>
    %c0_66 = arith.constant 0 : index
    %c0_67 = arith.constant 0 : index
    %109 = vector.load %arg16[%c0_66, %c0_67] : memref<8x1xf32, #tpu.memory_space<vmem>>, vector<8x1xf32>
    %110 = arith.addf %108, %109 : vector<8x1xf32>
    %cst_68 = arith.constant 0.000000e+00 : f32
    %111 = vector.broadcast %cst_68 : f32 to vector<8x1xf32>
    %112 = arith.maximumf %110, %111 : vector<8x1xf32>
    %c0_69 = arith.constant 0 : index
    %c0_70 = arith.constant 0 : index
    %113 = vector.load %arg17[%c0_69, %c0_70] : memref<16x8xbf16, #tpu.memory_space<vmem>>, vector<16x8xbf16>
    %114 = arith.truncf %112 : vector<8x1xf32> to vector<8x1xbf16>
    %cst_71 = arith.constant dense<0.000000e+00> : vector<16x1xf32>
    %115 = tpu.matmul %113, %114, %cst_71 {dimension_numbers = #tpu.dot_dimension_numbers<[1], [0], [0], [1], [0, 0, 1, 1], [], []>} : vector<16x8xbf16>, vector<8x1xbf16>, vector<16x1xf32> -> vector<16x1xf32>
    %c0_72 = arith.constant 0 : index
    %c0_73 = arith.constant 0 : index
    %116 = vector.load %arg18[%c0_72, %c0_73] : memref<16x1xf32, #tpu.memory_space<vmem>>, vector<16x1xf32>
    %117 = arith.addf %115, %116 : vector<16x1xf32>
    %118 = arith.negf %117 : vector<16x1xf32>
    %119 = math.exp %118 : vector<16x1xf32>
    %cst_74 = arith.constant 1.000000e+00 : f32
    %120 = vector.broadcast %cst_74 : f32 to vector<16x1xf32>
    %121 = arith.addf %120, %119 : vector<16x1xf32>
    %122 = arith.divf %120, %121 : vector<16x1xf32>
    %123 = vector.broadcast %122 : vector<16x1xf32> to vector<16x32xf32>
    %124 = arith.mulf %90, %123 : vector<16x32xf32>
    %125 = arith.addf %124, %1 : vector<16x32xf32>
    %c0_75 = arith.constant 0 : index
    %c0_76 = arith.constant 0 : index
    %c0_77 = arith.constant 0 : index
    %126 = vector.load %arg19[%c0_75, %c0_76, %c0_77] : memref<1x16x32xf32, #tpu.memory_space<vmem>>, vector<1x16x32xf32>
    %127 = vector.shape_cast %126 : vector<1x16x32xf32> to vector<16x32xf32>
    %128 = vector.shape_cast %125 : vector<16x32xf32> to vector<1x16x32xf32>
    tpu.vector_store %arg19[%c0_75, %c0_76, %c0_77], %128 {strides = array<i32>} : memref<1x16x32xf32, #tpu.memory_space<vmem>>, vector<1x16x32xf32>,
    return
  }
  func.func @transform_0(%arg0: i32, %arg1: memref<2xi32, #tpu.memory_space<smem>>) -> (i32, i32, i32) {
    %c0_i32 = arith.constant 0 : i32
    %c0_i32_0 = arith.constant 0 : i32
    %c0_i32_1 = arith.constant 0 : i32
    return %arg0, %c0_i32, %c0_i32_0 : i32, i32, i32
  }
  func.func @transform_1(%arg0: i32, %arg1: memref<2xi32, #tpu.memory_space<smem>>) -> (i32, i32) {
    %c0_i32 = arith.constant 0 : i32
    %c0_i32_0 = arith.constant 0 : i32
    %c0_i32_1 = arith.constant 0 : i32
    return %c0_i32, %c0_i32_0 : i32, i32
  }
  func.func @transform_2(%arg0: i32, %arg1: memref<2xi32, #tpu.memory_space<smem>>) -> (i32, i32) {
    %c0_i32 = arith.constant 0 : i32
    %c0_i32_0 = arith.constant 0 : i32
    %c0_i32_1 = arith.constant 0 : i32
    return %c0_i32, %c0_i32_0 : i32, i32
  }
  func.func @transform_3(%arg0: i32, %arg1: memref<2xi32, #tpu.memory_space<smem>>) -> (i32, i32) {
    %c0_i32 = arith.constant 0 : i32
    %c0_i32_0 = arith.constant 0 : i32
    %c0_i32_1 = arith.constant 0 : i32
    return %c0_i32, %c0_i32_0 : i32, i32
  }
  func.func @transform_4(%arg0: i32, %arg1: memref<2xi32, #tpu.memory_space<smem>>) -> (i32, i32) {
    %c0_i32 = arith.constant 0 : i32
    %c0_i32_0 = arith.constant 0 : i32
    %c0_i32_1 = arith.constant 0 : i32
    return %c0_i32, %c0_i32_0 : i32, i32
  }
  func.func @transform_5(%arg0: i32, %arg1: memref<2xi32, #tpu.memory_space<smem>>) -> (i32, i32, i32) {
    %c0_i32 = arith.constant 0 : i32
    %c0_i32_0 = arith.constant 0 : i32
    %c0_i32_1 = arith.constant 0 : i32
    %c0_i32_2 = arith.constant 0 : i32
    return %c0_i32, %c0_i32_0, %c0_i32_1 : i32, i32, i32
  }
  func.func @transform_6(%arg0: i32, %arg1: memref<2xi32, #tpu.memory_space<smem>>) -> (i32, i32, i32) {
    %c0_i32 = arith.constant 0 : i32
    %c0_i32_0 = arith.constant 0 : i32
    %c0_i32_1 = arith.constant 0 : i32
    %c0_i32_2 = arith.constant 0 : i32
    return %c0_i32, %c0_i32_0, %c0_i32_1 : i32, i32, i32
  }
  func.func @transform_7(%arg0: i32, %arg1: memref<2xi32, #tpu.memory_space<smem>>) -> (i32, i32, i32) {
    %c0_i32 = arith.constant 0 : i32
    %c0_i32_0 = arith.constant 0 : i32
    %c0_i32_1 = arith.constant 0 : i32
    %c0_i32_2 = arith.constant 0 : i32
    return %c0_i32, %c0_i32_0, %c0_i32_1 : i32, i32, i32
  }
  func.func @transform_8(%arg0: i32, %arg1: memref<2xi32, #tpu.memory_space<smem>>) -> (i32, i32, i32) {
    %c0_i32 = arith.constant 0 : i32
    %c0_i32_0 = arith.constant 0 : i32
    %c0_i32_1 = arith.constant 0 : i32
    %c0_i32_2 = arith.constant 0 : i32
    return %c0_i32, %c0_i32_0, %c0_i32_1 : i32, i32, i32
  }
  func.func @transform_9(%arg0: i32, %arg1: memref<2xi32, #tpu.memory_space<smem>>) -> (i32, i32) {
    %c0_i32 = arith.constant 0 : i32
    %c0_i32_0 = arith.constant 0 : i32
    %c0_i32_1 = arith.constant 0 : i32
    return %c0_i32, %c0_i32_0 : i32, i32
  }
  func.func @transform_10(%arg0: i32, %arg1: memref<2xi32, #tpu.memory_space<smem>>) -> (i32, i32) {
    %c0_i32 = arith.constant 0 : i32
    %c0_i32_0 = arith.constant 0 : i32
    %c0_i32_1 = arith.constant 0 : i32
    return %c0_i32, %c0_i32_0 : i32, i32
  }
  func.func @transform_11(%arg0: i32, %arg1: memref<2xi32, #tpu.memory_space<smem>>) -> (i32, i32) {
    %c0_i32 = arith.constant 0 : i32
    %c0_i32_0 = arith.constant 0 : i32
    %c0_i32_1 = arith.constant 0 : i32
    return %c0_i32, %c0_i32_0 : i32, i32
  }
  func.func @transform_12(%arg0: i32, %arg1: memref<2xi32, #tpu.memory_space<smem>>) -> (i32, i32) {
    %c0_i32 = arith.constant 0 : i32
    %c0_i32_0 = arith.constant 0 : i32
    %c0_i32_1 = arith.constant 0 : i32
    return %c0_i32, %c0_i32_0 : i32, i32
  }
  func.func @transform_13(%arg0: i32, %arg1: memref<2xi32, #tpu.memory_space<smem>>) -> (i32, i32) {
    %c0_i32 = arith.constant 0 : i32
    %c0_i32_0 = arith.constant 0 : i32
    %c0_i32_1 = arith.constant 0 : i32
    return %c0_i32, %c0_i32_0 : i32, i32
  }
  func.func @transform_14(%arg0: i32, %arg1: memref<2xi32, #tpu.memory_space<smem>>) -> (i32, i32) {
    %c0_i32 = arith.constant 0 : i32
    %c0_i32_0 = arith.constant 0 : i32
    %c0_i32_1 = arith.constant 0 : i32
    return %c0_i32, %c0_i32_0 : i32, i32
  }
  func.func @transform_15(%arg0: i32, %arg1: memref<2xi32, #tpu.memory_space<smem>>) -> (i32, i32) {
    %c0_i32 = arith.constant 0 : i32
    %c0_i32_0 = arith.constant 0 : i32
    %c0_i32_1 = arith.constant 0 : i32
    return %c0_i32, %c0_i32_0 : i32, i32
  }
  func.func @transform_16(%arg0: i32, %arg1: memref<2xi32, #tpu.memory_space<smem>>) -> (i32, i32) {
    %c0_i32 = arith.constant 0 : i32
    %c0_i32_0 = arith.constant 0 : i32
    %c0_i32_1 = arith.constant 0 : i32
    return %c0_i32, %c0_i32_0 : i32, i32
  }
  func.func @transform_17(%arg0: i32, %arg1: memref<2xi32, #tpu.memory_space<smem>>) -> (i32, i32, i32) {
    %c0_i32 = arith.constant 0 : i32
    %c0_i32_0 = arith.constant 0 : i32
    %c0_i32_1 = arith.constant 0 : i32
    return %arg0, %c0_i32, %c0_i32_0 : i32, i32, i32
  }
}

</mosaic_0001>

<bundles_post_ra>
// kernel: tpu_custom_call.1
= control target key start
LH: loop header
LB: loop body
LE: loop exit
PB: predicated region body
PF: predicated region fallthrough
CT: control target
= control target key end

     0   :  { %s1797_s0 = inlined_call_operand.vmem [shape: s32[2], index: 0, kind: input, shape index: {}]   ;;  %s1798_s1 = inlined_call_operand.vmem [shape: f32[2,16,32], index: 1, kind: input, shape index: {}]   ;;  %s1799_s2 = inlined_call_operand.vmem [shape: bf16[16,16], index: 2, kind: input, shape index: {}]   ;;  %s1800_s3 = inlined_call_operand.vmem [shape: f32[16,1], index: 3, kind: input, shape index: {}]   ;;  %s1801_s4 = inlined_call_operand.vmem [shape: f32[16,1], index: 4, kind: input, shape index: {}]   ;;  %s1802_s5 = inlined_call_operand.vmem [shape: f32[16,1], index: 5, kind: input, shape index: {}]   ;;  %s1803_s6 = inlined_call_operand.vmem [shape: bf16[3,4,4], index: 6, kind: input, shape index: {}]   ;;  %s1804_s7 = inlined_call_operand.vmem [shape: f32[3,4,1], index: 7, kind: input, shape index: {}]   ;;  %s1805_s8 = inlined_call_operand.vmem [shape: f32[3,4,1], index: 8, kind: input, shape index: {}]   ;;  %s1806_s9 = inlined_call_operand.vmem [shape: f32[3,4,1], index: 9, kind: input, shape index: {}]   ;;  %s1807_s10 = inlined_call_operand.vmem [shape: bf16[16,16], index: 10, kind: input, shape index: {}]   ;;  %s1808_s11 = inlined_call_operand.vmem [shape: f32[16,1], index: 11, kind: input, shape index: {}]   ;;  %s1809_s12 = inlined_call_operand.vmem [shape: f32[16,1], index: 12, kind: input, shape index: {}]   ;;  %s1810_s13 = inlined_call_operand.vmem [shape: f32[16,1], index: 13, kind: input, shape index: {}]   ;;  %s1811_s14 = inlined_call_operand.vmem [shape: bf16[8,16], index: 14, kind: input, shape index: {}]   ;;  %s1812_s15 = inlined_call_operand.vmem [shape: f32[8,1], index: 15, kind: input, shape index: {}]   ;;  %s1813_s16 = inlined_call_operand.vmem [shape: bf16[16,8], index: 16, kind: input, shape index: {}]   ;;  %s1814_s17 = inlined_call_operand.vmem [shape: f32[16,1], index: 17, kind: input, shape index: {}]   ;;  %s1815_s18 = inlined_call_operand.hbm [shape: f32[2,16,32], index: 18, kind: output, shape index: {}]  }
   0x1   :  { %1819 = sst [smem:[#allocation11_spill]] %s1797_s0 }
   0x2   :  { %1820 = sst [smem:[#allocation12_spill]] %s1798_s1  ;;  %s1823_s29 = sld [smem:[#allocation11_spill]] }
   0x3   :  { %1821 = sst [smem:[#allocation13_spill]] %s1799_s2 }
   0x4   :  { %1822 = sst [smem:[#allocation14_spill]] %s1807_s10 }
   0x8   :  { %s23_s10 = sshll.u32 %s1823_s29, 4  ;;  %s24_s10 = int_to_ptr.vmem [resolvable:$true] %s23_s10 }
   0x9   :  { %s1366_s30 = scalar_lea.vmem %s24_s10, 16  ;;  %p1371_p1 = scmp.lt.s32.totalorder %s24_s10, %s24_s10 }
   0xa   :  { %p1367_p0 = scmp.ne.s32.totalorder %s24_s10, %s1366_s30  ;;  %p1372_p2 = scmp.lt.s32.totalorder %s1366_s30, %s1366_s30 }
   0xc   :  { %p1373_p3 = por %p1372_p2, %p1371_p1 }
   0xe   :  { %p1374_p4 = pnand %p1373_p3, %p1367_p0 }
  0x10   :  { %1377 = shalt.err (!%p1374_p4)  }
  0x11   :  { %s1444_s0 = smov [#allocation3]  }
  0x12   :  { %26 = dma.vmem_to_smem %s24_s10, 16, %s1444_s0, [#allocation2] }
  0x13   :  { %1422 = dma.done.wait [#allocation2], 16 }
  0x14   :  { %1423 = vsyncadd [#allocation2], 4294967280 }
  0x15   :  { %28 = sfence }
  0x16   :  { %29 = vsyncpa [#allocation5], 0 }
  0x17   :  { %31 = vsyncpa [#allocation5 + $0x1], 0  ;;  %s1549_s19 = smov 0   ;;  %s1551_s1 = smov 0  }
  0x18   :  { %s1553_s20 = smov 0   ;;  %s1555_s21 = smov 0  }
  0x19 LB: > { %1824 = sst [smem:[#allocation8_spill]] %s1438_s20  ;;  %s1570_s10 = sadd.s32 4294967295, %s1442_s21   ;;  %s1442_s21 = sphi %s1555_s21, %s1832_s21   ;;  %s1438_s20 = sphi %s1553_s20, %s1834_s20   ;;  %s1434_s1 = sphi %s1551_s1, %s1836_s1   ;;  %s1430_s19 = sphi %s1549_s19, %s1835_s19  }
  0x1a   : > { %s1213_s22 = sadd.s32 4294967294, %s1442_s21   ;;  %s1574_s2 = sadd.s32 1, %s1442_s21  }
  0x1b   : > { %1825 = sst [smem:[#allocation9_spill]] %s1574_s2  ;;  %s406_s23 = sadd.s32 1, %s1438_s20 }
  0x1c   : > { %s403_s24 = ssub.s32 %s1442_s21, %s1574_s2  ;;  %p416_p5 = scmp.ne.s32.totalorder %s1438_s20, %s1434_s1 }
  0x1d   : > { %p404_p6 = scmp.eq.s32.totalorder %s403_s24, 0  ;;  %p417_p7 = scmp.eq.s32.totalorder %s1570_s10, 1 }
  0x1e   : > { %p422_p8 = scmp.ne.s32.totalorder %s1434_s1, %s1430_s19  ;;  %p423_p9 = scmp.eq.s32.totalorder %s1213_s22, 1 }
  0x1f   : > { %s1585_s25 = scalar_select %p404_p6, %s1438_s20, %s406_s23  }
  0x20   : > { %p1587_p10 = por %p417_p7, %p416_p5  ;;  %p1591_p11 = por %p423_p9, %p422_p8 }
  0x21   : > { %1826 = sst [smem:[#allocation10_spill]] %s1585_s25  ;;  %p1216_p12 = scmp.ge.s32.totalorder %s1442_s21, 1 }
  0x22   : > { %p497_p13 = scmp.lt.s32.totalorder %s1442_s21, 3 }
  0x24   : > { %p498_p0 = pnand %p1216_p12, %p497_p13 }
  0x25   : > { %p549_p1 = scmp.lt.s32.totalorder (!%p498_p0), %s1570_s10, 1  ;;  %v1445_v0 = vmov (!%p498_p0), 0.0   ;;  %vm1446_vm0 = vmmov (!%p498_p0), 0   ;;  %v559_v1 = vld [vmem:[%s1800_s3] sm:$0xff] (!%p498_p0)  ;;  %v1447_v2 = vmov (!%p498_p0), 0   ;;  %v560_v5 = vld [vmem:[%s1800_s3 + $0x8] sm:$0xff] (!%p498_p0) }
  0x26   : > { %501 = sbr.rel (%p498_p0) target bundleno = 1956 (0x7a4), region = 88  ;;  %1262 = vmatprep.subr.bf16.mxu0 (!%p498_p0), %v1445_v0  ;;  %1264 = vmatprep.mubr.msk.bf16.mxu0 (!%p498_p0), %vm1446_vm0, %v1445_v0  ;;  %v563_v3 = vld [vmem:[%s1802_s5] sm:$0xff] (!%p498_p0)  ;;  %s1829_s0 = sld [smem:[#allocation12_spill]] (!%p498_p0)  ;;  %vm581_vm1 = vcmask (!%p498_p0), 130048   ;;  %v562_v11 = vld [vmem:[%s1801_s4 + $0x8] sm:$0xff] (!%p498_p0)  ;;  %vm668_vm2 = vcmask (!%p498_p0), 1041408  }
  0x27   : > { %1351 = vset.pattern.permute.xlu0 (!%p498_p0), %v1447_v2  ;;  %1352 = vset.pattern.permute.xlu1 (!%p498_p0), %v1447_v2  ;;  %v561_v4 = vld [vmem:[%s1801_s4] sm:$0xff] (!%p498_p0)  ;;  %s1830_s25 = sld [smem:[#allocation13_spill]] (!%p498_p0)  ;;  %v564_v13 = vld [vmem:[%s1802_s5 + $0x8] sm:$0xff] (!%p498_p0)  ;;  %vm664_vm3 = vcmask (!%p498_p0), 31744   ;;  %vm884_vm4 = vcmask (!%p498_p0), 1043456   ;;  %s1831_s28 = sld [smem:[#allocation14_spill]] (!%p498_p0) }
  0x28   : > { %568 = vperm.xlu0 (!%p498_p0), %1351, %v559_v1   ;;  %642 = vperm.xlu1 (!%p498_p0), %1352, %v563_v3   ;;  %v653_v10 = vld [vmem:[%s1804_s7] sm:$0xf] (!%p498_p0)  ;;  %v1224_v15 = vld [vmem:[%s1804_s7 + $0x4] sm:$0xf] (!%p498_p0)  ;;  %v1229_v18 = vld [vmem:[%s1804_s7 + $0x8] sm:$0xf] (!%p498_p0) }
  0x29   : > { %1268 = vmatprep.subr.bf16.mxu1 (!%p498_p0), %v1445_v0  ;;  %1270 = vmatprep.mubr.msk.bf16.mxu1 (!%p498_p0), %vm1446_vm0, %v1445_v0  ;;  %v654_v12 = vld [vmem:[%s1805_s8] sm:$0xf] (!%p498_p0)  ;;  %v1225_v16 = vld [vmem:[%s1805_s8 + $0x4] sm:$0xf] (!%p498_p0)  ;;  %v1230_v19 = vld [vmem:[%s1805_s8 + $0x8] sm:$0xf] (!%p498_p0) }
  0x2a   : > { %v655_v14 = vld [vmem:[%s1806_s9] sm:$0xf] (!%p498_p0)  ;;  %v1226_v17 = vld [vmem:[%s1806_s9 + $0x4] sm:$0xf] (!%p498_p0)  ;;  %v1231_v20 = vld [vmem:[%s1806_s9 + $0x8] sm:$0xf] (!%p498_p0) }
  0x2b   : > { %v889_v21 = vld [vmem:[%s1808_s11] sm:$0xff] (!%p498_p0)  ;;  %v890_v22 = vld [vmem:[%s1808_s11 + $0x8] sm:$0xff] (!%p498_p0)  ;;  %vm994_vm6 = vcmask (!%p498_p0), 261120   ;;  %vm1061_vm7 = vcmask (!%p498_p0), 64512  }
  0x2c   : > { %630 = vperm.xlu0 (!%p498_p0), %1351, %v561_v4   ;;  %573 = vperm.xlu1 (!%p498_p0), %1352, %v560_v5   ;;  %v891_v23 = vld [vmem:[%s1809_s12] sm:$0xff] (!%p498_p0)  ;;  %v892_v24 = vld [vmem:[%s1809_s12 + $0x8] sm:$0xff] (!%p498_p0) }
  0x2d   : > { %s550_s30 = scalar_select %p549_p1, %s1570_s10, 1  ;;  %v1353_v9 = vld [vmem:[%s1830_s25] sm:$0xff]   ;;  %v894_v26 = vld [vmem:[%s1810_s13 + $0x8] sm:$0xff] }
  0x2e   : > { %v893_v25 = vld [vmem:[%s1810_s13] sm:$0xff] }
  0x2f   : > { %s1246_s23 = sshll.u32 %s550_s30, 4  ;;  %v652_v41 = vld [vmem:[%s1803_s6] sm:$0x3]  ;;  %v1223_v63 = vld [vmem:[%s1803_s6 + $0x2] sm:$0x3]  ;;  %s1247_s30 = sshll.u32 %s1570_s10, 8 }
  0x30   : > { %s553_s22 = scalar_lea.vmem %s1829_s0, %s1246_s23  ;;  %659 = vperm.xlu0 %1351, %v653_v10   ;;  %635 = vperm.xlu1 %1352, %v562_v11   ;;  %s981_s23 = sld [smem:[#allocation3 + %s1570_s10]] }
  0x31   : > { %v1620_v6 = vld [vmem:[%s553_s22] sm:$0xff]  ;;  %v1622_v7 = vld [vmem:[%s553_s22 + $0x8] sm:$0xff]  ;;  %s546_s22 = sand.u32 1, %s1434_s1  }
  0x32   : > { %v565_v8 = vpack.c.bf16 %v1622_v7, %v1620_v6  ;;  %s1217_s20 = sshll.u32 %s546_s22, 4  ;;  %s1756_s10 = scalar_lea.sflag [#allocation5], %s546_s22 }
  0x33   : > { %s548_s2 = scalar_lea.vmem [#allocation4], %s1217_s20 }
  0x34   : > { %1263 = vmatpush3.bf16.msra.mxu0 %v565_v8  ;;  %715 = vperm.xlu0 %1351, %v654_v12   ;;  %s1151_s25 = sshll.u32 %s548_s2, 4  ;;  %s1751_s25 = int_to_ptr.vmem [resolvable:$true] %s1151_s25 }
  0x35   : > { %1274 = vmatprep.subr.bf16.mxu0 %v1445_v0  ;;  %647 = vperm.xlu1 %1352, %v564_v13  }
  0x36   : > { %s988_s29 = scvt.s32.f32 %s981_s23 }
  0x37   : > { %1265 = vmatmul.mubr.msk.bf16.vlgmr.msra.gmra.mrb[0].mxu0 %vm581_vm1, %v1353_v9 }
  0x38   : > { %1276 = vmatprep.mubr.msk.bf16.mxu0 %vm1446_vm0, %v1445_v0  ;;  %721 = vperm.xlu0 %1351, %v655_v14  }
  0x39   : > { %737 = vperm.xlu1 %1352, %v1224_v15  }
  0x3c   : > { %789 = vperm.xlu0 %1351, %v1225_v16  }
  0x3d   : > { %795 = vperm.xlu1 %1352, %v1226_v17  }
  0x40   : > { %814 = vperm.xlu0 %1351, %v1229_v18  }
  0x41   : > { %868 = vperm.xlu1 %1352, %v1230_v19   ;;  %v1228_v19 = vld [vmem:[%s1803_s6 + $0x4] sm:$0x3] }
  0x44   : > { %874 = vperm.xlu0 %1351, %v1231_v20  }
  0x45   : > { %898 = vperm.xlu1 %1352, %v889_v21  }
  0x48   : > { %903 = vperm.xlu0 %1351, %v890_v22  }
  0x49   : > { %959 = vperm.xlu1 %1352, %v891_v23  }
  0x4c   : > { %964 = vperm.xlu0 %1351, %v892_v24  }
  0x4d   : > { %971 = vperm.xlu1 %1352, %v893_v25  }
  0x50   : > { %976 = vperm.xlu0 %1351, %v894_v26  }
  0xa7   : > { %v569_v27 = vpop.permute.xlu0 %568  ;;  %v643_v36 = vpop.permute.xlu1 %642 }
  0xab   : > { %v631_v34 = vpop.permute.xlu0 %630  ;;  %v574_v42 = vpop.permute.xlu1 %573 }
  0xaf   : > { %v660_v43 = vpop.permute.xlu0 %659  ;;  %v636_v45 = vpop.permute.xlu1 %635 }
  0xb3   : > { %v716_v47 = vpop.permute.xlu0 %715 }
  0xb4   : > { %v648_v57 = vpop.permute.xlu1 %647 }
  0xb7   : > { %v722_v56 = vpop.permute.xlu0 %721 }
  0xb8   : > { %v738_v1 = vpop.permute.xlu1 %737 }
  0xbb   : > { %v790_v10 = vpop.permute.xlu0 %789 }
  0xbc   : > { %v796_v12 = vpop.permute.xlu1 %795 }
  0xbf   : > { %v815_v20 = vpop.permute.xlu0 %814 }
 0x10a   : > { %v619_v28 = vpop.f32.mrb[0].mxu0 }
 0x10b   : > { %v620_v29 = vadd.f32 %v619_v28, %v569_v27  ;;  %v1266_v30 = vpop.f32.mrb[1].mxu0  ;;  %v869_v27 = vpop.permute.xlu1 %868 }
 0x10c   : > { %v622_v31 = vpop.f32.mrb[2].mxu0 }
 0x10d   : > { %v626_v32 = vmax.f32 %v620_v29, 0.0  ;;  %v1267_v33 = vpop.f32.mrb[3].mxu0  ;;  %v623_v44 = vadd.f32 %v622_v31, %v574_v42  ;;  %v875_v29 = vpop.permute.xlu0 %874 }
 0x10f   : > { %v638_v35 = vmul.f32 %v631_v34, %v626_v32  ;;  %v627_v46 = vmax.f32 %v623_v44, 0.0 }
 0x111   : > { %v1684_v37 = vadd.f32 %v643_v36, %v638_v35  ;;  %v639_v52 = vmul.f32 %v636_v45, %v627_v46  ;;  %v1354_v36 = vld [vmem:[%s1831_s28] sm:$0xff]   ;;  %v984_v45 = vstv %s981_s23  ;;  %s1749_s23 = scalar_lea.hbm %s1815_s18, %s1247_s30 }
 0x113   : > { %v656_v38 = vpack.c.bf16 %v1684_v37, %v1684_v37  ;;  %v651_v58 = vadd.f32 %v648_v57, %v639_v52 }
 0x115   : > { %v663_v39 = vrot.slane %v656_v38, 2  ;;  %v989_v38 = vstv %s988_s29  ;;  %s1378_s29 = scalar_lea.vmem %s1751_s25, 256 }
 0x116   : > { %1356 = vrcp.f32 %v989_v38  ;;  %p1379_p2 = scmp.ne.s32.totalorder %s1751_s25, %s1378_s29 }
 0x117   : > { %v670_v40 = vsel %vm668_vm2, %v663_v39, 0  ;;  %v899_v39 = vpop.permute.xlu1 %898 }
 0x118   : > { %1269 = vmatpush3.bf16.msra.mxu1 %v670_v40  ;;  %v982_v40 = vlaneseq  ;;  %p1380_p3 = pnand %p1379_p2, %p1587_p10 }
 0x119   : > { %1280 = vmatprep.subr.bf16.mxu1 %v1445_v0 }
 0x11a   : > { %v983_v42 = vand.u32 127, %v982_v40  ;;  %p1381_p4 = pneg %p1380_p3 }
 0x11b   : > { %1271 = vmatmul.mubr.msk.bf16.vlgmr.msra.gmra.mrb[0].mxu1 %vm664_vm3, %v652_v41  ;;  %v904_v41 = vpop.permute.xlu0 %903 }
 0x11c   : > { %1282 = vmatprep.mubr.msk.bf16.mxu1 %vm1446_vm0, %v1445_v0  ;;  %vm985_vm5 = vcmp.lt.s32.totalorder %v983_v42, %v984_v45 }
 0x1ee   : > { %v706_v48 = vpop.f32.mrb[0].mxu1 }
 0x1ef   : > { %v707_v49 = vadd.f32 %v706_v48, %v660_v43  ;;  %v1272_v50 = vpop.f32.mrb[1].mxu1  ;;  %v960_v43 = vpop.permute.xlu1 %959 }
 0x1f0   : > { %v709_v51 = vpop.f32.mrb[2].mxu1  ;;  %v965_v48 = vpop.permute.xlu0 %964 }
 0x1f1   : > { %v712_v53 = vmax.f32 %v707_v49, 0.0  ;;  %v1273_v54 = vpop.f32.mrb[3].mxu1 }
 0x1f3   : > { %v718_v55 = vmul.f32 %v716_v47, %v712_v53 }
 0x1f5   : > { %v724_v59 = vadd.f32 %v722_v56, %v718_v55  ;;  %v972_v55 = vpop.permute.xlu1 %971  ;;  %v1235_v56 = vsel %vm985_vm5, 1.0, %v1445_v0 }
 0x1f7   : > { %v725_v60 = vadd.f32 %v724_v59, %v651_v58  ;;  %v879_v30 = vrot.slane %v724_v59, 4  ;;  %v977_v59 = vpop.permute.xlu0 %976 }
 0x1f9   : > { %v734_v61 = vpack.c.bf16 %v725_v60, %v725_v60  ;;  %v885_v33 = vsel %vm884_vm4, %v1684_v37, %v879_v30  ;;  %v1357_v37 = vpop.eup %1356 }
 0x1fa   : > { %1304 = vpush %v1357_v37 }
 0x1fb   : > { %v744_v62 = vsel %vm668_vm2, %v734_v61, 0 }
 0x1fc   : > { %1275 = vmatpush3.bf16.msra.mxu0 %v744_v62 }
 0x1fd   : > { %1286 = vmatprep.subr.bf16.mxu0 %v1445_v0 }
 0x1ff   : > { %1277 = vmatmul.mubr.msk.bf16.vlgmr.msra.gmra.mrb[4].mxu0 %vm664_vm3, %v1223_v63 }
 0x200   : > { %1288 = vmatprep.mubr.msk.bf16.mxu0 %vm1446_vm0, %v1445_v0 }
 0x22b   : > { %s1305_s0 = spop %1304 }
 0x2d2   : > { %v780_v2 = vpop.f32.mrb[4].mxu0 }
 0x2d3   : > { %v781_v3 = vadd.f32 %v780_v2, %v738_v1  ;;  %v1278_v4 = vpop.f32.mrb[5].mxu0  ;;  %v1001_v2 = vstv %s1305_s0  ;;  %s1448_s0 = smov [#allocation4]  }
 0x2d4   : > { %v783_v5 = vpop.f32.mrb[6].mxu0  ;;  %s1382_s20 = sshll.u32 %s1448_s0, 4  ;;  %s1383_s20 = int_to_ptr.vmem [resolvable:$false] %s1382_s20 }
 0x2d5   : > { %v786_v8 = vmax.f32 %v781_v3, 0.0  ;;  %v1279_v9 = vpop.f32.mrb[7].mxu0  ;;  %s1384_s30 = scalar_lea.vmem %s1383_s20, 512  ;;  %p1385_p5 = scmp.lt.s32.totalorder %s1751_s25, %s1383_s20 }
 0x2d6   : > { %v1004_v9 = vld [vmem:[%s1811_s14] sm:$0xf]  ;;  %p1386_p6 = scmp.lt.s32.totalorder %s1384_s30, %s1378_s29 }
 0x2d7   : > { %v792_v11 = vmul.f32 %v790_v10, %v786_v8  ;;  %v1006_v10 = vld [vmem:[%s1812_s15] sm:$0xff] }
 0x2d8   : > { %p1387_p7 = por %p1386_p6, %p1385_p5 }
 0x2d9   : > { %v798_v13 = vadd.f32 %v796_v12, %v792_v11 }
 0x2da   : > { %p1388_p8 = pnand %p1387_p7, %p1381_p4 }
 0x2db   : > { %v800_v14 = vrot.slane %v798_v13, 4 }
 0x2dd   : > { %v802_v15 = vadd.f32 %v800_v14, %v651_v58 }
 0x2df   : > { %v811_v16 = vpack.c.bf16 %v802_v15, %v802_v15 }
 0x2e1   : > { %v818_v17 = vrot.slane %v811_v16, 2 }
 0x2e3   : > { %v823_v18 = vsel %vm668_vm2, %v818_v17, 0 }
 0x2e4   : > { %1281 = vmatpush3.bf16.msra.mxu1 %v823_v18 }
 0x2e5   : > { %1292 = vmatprep.subr.bf16.mxu1 %v1445_v0 }
 0x2e7   : > { %1283 = vmatmul.mubr.msk.bf16.vlgmr.msra.gmra.mrb[4].mxu1 %vm664_vm3, %v1228_v19  ;;  %v1355_v19 = vld [vmem:[%s1813_s16] sm:$0xff]  }
 0x2e8   : > { %1294 = vmatprep.mubr.msk.bf16.mxu1 %vm1446_vm0, %v1445_v0 }
 0x3ba   : > { %v859_v21 = vpop.f32.mrb[4].mxu1 }
 0x3bb   : > { %v860_v22 = vadd.f32 %v859_v21, %v815_v20  ;;  %v1284_v23 = vpop.f32.mrb[5].mxu1  ;;  %v1054_v20 = vld [vmem:[%s1814_s17] sm:$0xff] }
 0x3bc   : > { %v862_v24 = vpop.f32.mrb[6].mxu1 }
 0x3bd   : > { %v865_v25 = vmax.f32 %v860_v22, 0.0  ;;  %v1285_v26 = vpop.f32.mrb[7].mxu1  ;;  %v1055_v22 = vld [vmem:[%s1814_s17 + $0x8] sm:$0xff] }
 0x3bf   : > { %v871_v28 = vmul.f32 %v869_v27, %v865_v25 }
 0x3c1   : > { %v877_v31 = vadd.f32 %v875_v29, %v871_v28 }
 0x3c3   : > { %v882_v32 = vrot.slane %v877_v31, 4 }
 0x3c5   : > { %v886_v34 = vsel %vm884_vm4, %v798_v13, %v882_v32 }
 0x3c6   : > { %v895_v35 = vpack.c.bf16 %v886_v34, %v885_v33 }
 0x3c8   : > { %1287 = vmatpush3.bf16.msra.mxu0 %v895_v35 }
 0x3c9   : > { %1298 = vmatprep.subr.bf16.mxu0 %v1445_v0 }
 0x3cb   : > { %1289 = vmatmul.mubr.msk.bf16.vlgmr.msra.gmra.mrb[8].mxu0 %vm581_vm1, %v1354_v36 }
 0x3cc   : > { %1300 = vmatprep.mubr.msk.bf16.mxu0 %vm1446_vm0, %v1445_v0 }
 0x49e   : > { %v948_v44 = vpop.f32.mrb[8].mxu0 }
 0x49f   : > { %v949_v46 = vadd.f32 %v948_v44, %v899_v39  ;;  %v1290_v47 = vpop.f32.mrb[9].mxu0 }
 0x4a0   : > { %v951_v49 = vpop.f32.mrb[10].mxu0 }
 0x4a1   : > { %v955_v50 = vmax.f32 %v949_v46, 0.0  ;;  %v952_v51 = vadd.f32 %v951_v49, %v904_v41  ;;  %v1291_v52 = vpop.f32.mrb[11].mxu0 }
 0x4a3   : > { %v967_v53 = vmul.f32 %v960_v43, %v955_v50  ;;  %v956_v54 = vmax.f32 %v952_v51, 0.0 }
 0x4a5   : > { %v968_v57 = vmul.f32 %v965_v48, %v956_v54  ;;  %v979_v58 = vadd.f32 %v972_v55, %v967_v53 }
 0x4a7   : > { %v992_v60 = vmul.f32 %v1235_v56, %v979_v58  ;;  %v980_v61 = vadd.f32 %v977_v59, %v968_v57 }
 0x4a9   : > { %v995_v62 = vsel %vm994_vm6, %v992_v60, 0.0  ;;  %v993_v63 = vmul.f32 %v1235_v56, %v980_v61 }
 0x4aa   : > { %996 = vadd.xlane.f32.xlu1 %v995_v62 }
 0x4ab   : > { %v998_v1 = vsel %vm994_vm6, %v993_v63, 0.0 }
 0x4ac   : > { %999 = vadd.xlane.f32.xlu0 %v998_v1 }
 0x537   : > { %v997_v3 = vpop.xlane.xlu1 %996 }
 0x538   : > { %v1002_v5 = vmul.f32 %v1001_v2, %v997_v3 }
 0x539   : > { %v1000_v4 = vpop.xlane.xlu0 %999 }
 0x53a   : > { %v1003_v8 = vmul.f32 %v1001_v2, %v1000_v4 }
 0x53c   : > { %v1005_v0 = vpack.c.bf16 %v1003_v8, %v1002_v5 }
 0x53e   : > { %1293 = vmatpush3.bf16.msra.mxu1 %v1005_v0 }
 0x541   : > { %1295 = vmatmul.mubr.msk.bf16.vlgmr.msra.gmra.mrb[8].mxu1 %vm581_vm1, %v1004_v9 }
 0x614   : > { %v1044_v11 = vpop.f32.mrb[8].mxu1 }
 0x615   : > { %v1045_v12 = vadd.f32 %v1044_v11, %v1006_v10  ;;  %v1296_v13 = vpop.f32.mrb[9].mxu1 }
 0x616   : > { %v1047_v14 = vpop.f32.mrb[10].mxu1 }
 0x617   : > { %v1050_v15 = vmax.f32 %v1045_v12, 0.0  ;;  %v1297_v16 = vpop.f32.mrb[11].mxu1 }
 0x619   : > { %v1053_v17 = vpack.c.bf16 %v1050_v15, %v1050_v15 }
 0x61b   : > { %v1066_v18 = vsel %vm884_vm4, %v1053_v17, 0 }
 0x61c   : > { %1299 = vmatpush3.bf16.msra.mxu0 %v1066_v18 }
 0x61f   : > { %1301 = vmatmul.mubr.msk.bf16.vlgmr.msra.gmra.mrb[12].mxu0 %vm1061_vm7, %v1355_v19 }
 0x6f2   : > { %v1102_v21 = vpop.f32.mrb[12].mxu0 }
 0x6f3   : > { %v1103_v23 = vadd.f32 %v1102_v21, %v1054_v20  ;;  %v1302_v24 = vpop.f32.mrb[13].mxu0 }
 0x6f4   : > { %v1105_v25 = vpop.f32.mrb[14].mxu0 }
 0x6f5   : > { %v1239_v26 = vmul.f32 -1.442695, %v1103_v23  ;;  %v1106_v27 = vadd.f32 %v1105_v25, %v1055_v22  ;;  %v1303_v28 = vpop.f32.mrb[15].mxu0 }
 0x6f7   : > { %1358 = vpow2.f32 %v1239_v26  ;;  %v1240_v29 = vmul.f32 -1.442695, %v1106_v27 }
 0x6f9   : > { %1360 = vpow2.f32 %v1240_v29 }
 0x701   : > { %v1359_v30 = vpop.eup %1358 }
 0x702   : > { %v1115_v31 = vadd.f32 1.0, %v1359_v30 }
 0x703   : > { %v1361_v32 = vpop.eup %1360 }
 0x704   : > { %1362 = vrcp.f32 %v1115_v31  ;;  %v1116_v33 = vadd.f32 1.0, %v1361_v32 }
 0x706   : > { %1364 = vrcp.f32 %v1116_v33 }
 0x70e   : > { %v1363_v34 = vpop.eup %1362 }
 0x70f   : > { %1123 = vperm.xlu0 %1351, %v1363_v34  }
 0x710   : > { %v1365_v35 = vpop.eup %1364 }
 0x711   : > { %1128 = vperm.xlu1 %1352, %v1365_v35  }
 0x78e   : > { %v1124_v36 = vpop.permute.xlu0 %1123 }
 0x78f   : > { %v1131_v38 = vmul.f32 %v1124_v36, %v979_v58 }
 0x790   : > { %v1129_v37 = vpop.permute.xlu1 %1128 }
 0x791   : > { %v1133_v39 = vadd.f32 %v1131_v38, %v1620_v6  ;;  %v1132_v40 = vmul.f32 %v1129_v37, %v980_v61 }
 0x793   : > { %1135 = vst.msk [vmem:[%s548_s2] sm:$0xff] %vm994_vm6, %v1133_v39  ;;  %v1134_v41 = vadd.f32 %v1132_v40, %v1622_v7 }
 0x795   : > { %1136 = vst.msk [vmem:[%s548_s2 + $0x8] sm:$0xff] %vm994_vm6, %v1134_v41 }
 0x796   : > { %1391 = shalt.err (!%p1388_p8)
}
 0x797   : > { %s1392_s22 = scalar_lea.hbm %s1749_s23, 256  ;;  %s1396_s28 = scalar_lea.hbm %s1815_s18, 512 }
 0x798   : > { %p1393_p9 = scmp.ne.s32.totalorder %s1749_s23, %s1392_s22  ;;  %p1397_p0 = scmp.lt.u32.totalorder %s1749_s23, %s1815_s18 }
 0x799   : > { %p1398_p1 = scmp.lt.u32.totalorder %s1396_s28, %s1392_s22  ;;  %p1400_p3 = scmp.lt.u32.totalorder %s1392_s22, %s1749_s23 }
 0x79a   : > { %p1394_p12 = pnand %p1393_p9, %p1587_p10 }
 0x79b   : > { %p1399_p2 = por %p1398_p1, %p1397_p0 }
 0x79c   : > { %p1395_p13 = pneg %p1394_p12 }
 0x79d   : > { %p1401_p4 = por %p1400_p3, %p1399_p2 }
 0x79f   : > { %p1402_p5 = pnand %p1401_p4, %p1395_p13 }
 0x7a1   : > { %1405 = shalt.err (!%p1402_p5)
}
 0x7a2   : > { %s1449_s29 = smov 128   ;;  %s1450_s30 = smov 8  }
 0x7a3   : > { %1306 = dma.vmem_to_hbm [thread:$0]  (%p1587_p10), %s1751_s25, 256, %s1749_s23, %s1756_s10, %s1449_s29, %s1449_s29, %s1450_s30  }
 0x7a4 PF: > { %p1312_p6 = scmp.ge.s32.totalorder %s1442_s21, 2  ;;  %s1166_s2 = sand.u32 1, %s1430_s19  }
 0x7a5   : > { %s1167_s22 = scalar_lea.sflag [#allocation5], %s1166_s2 }
 0x7a6   : > { %p1309_p7 = pnand %p1312_p6, %p1591_p11 }
 0x7a8   : > { %1425 = dma.done.wait (!%p1309_p7), %s1167_s22, 256  }
 0x7a9   : > { %1427 = vsyncadd (!%p1309_p7), %s1167_s22, 4294967040  ;;  %s1832_s21 = sld [smem:[#allocation9_spill]]  ;;  %s1833_s24 = sld [smem:[#allocation8_spill]] }
 0x7aa   : > { %s1834_s20 = sld [smem:[#allocation10_spill]]  ;;  %s1835_s19 = smov %s1434_s1 }
 0x7af   : > { %p34_p8 = scmp.ge.s32.totalorder %s1832_s21, 4   ;;  %s1836_s1 = smov %s1833_s24 }
 0x7b1   :  { %36 = sbr.rel (!%p34_p8) target bundleno = 25 (0x19), region = 131 }
 0x7b8   :  { %1172 = vsyncpa [#allocation5], 1 }
 0x7b9   :  { %1174 = vsyncpa [#allocation5 + $0x1], 1 }

</bundles_post_ra>
